<compile_context>
chip_gen: v7x
topology: tpu7x:2x2x1
jax: 0.10.0
libtpu: 0.0.40
codegen_flags: <defaults>
</compile_context>

<pallas_src>
import functools
import math
from typing import NamedTuple

import jax
import jax.numpy as jnp
from jax import lax
from jax.experimental import pallas as pl
from jax.experimental.pallas import tpu as pltpu

LN_EPS = 1e-5
_INV_SQRT2 = 1.0 / math.sqrt(2.0)
_MIB = 1024 * 1024


# --------------------------------------------------------------------------
# Per-generation tiling / VMEM defaults.
# --------------------------------------------------------------------------
def _hw_config():
    kind = ""
    try:
        kind = jax.devices()[0].device_kind.lower()
    except Exception:
        pass
    if "v7" in kind:
        # 64 MiB physical VMEM: leave headroom for compiler scratch.
        return dict(vmem_limit=52 * _MIB, dec_tm=512, pro_tm=128, tv=1024, tk=256)
    if "v6" in kind:
        return dict(vmem_limit=100 * _MIB, dec_tm=512, pro_tm=256, tv=1024, tk=512)
    if "v5" in kind:
        # v5e only needs ~240 FLOP/byte; tm=256 already saturates the MXU.
        return dict(vmem_limit=100 * _MIB, dec_tm=256, pro_tm=256, tv=2048, tk=1024)
    # Unknown generation: conservative settings that fit every listed chip.
    return dict(vmem_limit=48 * _MIB, dec_tm=256, pro_tm=256, tv=1024, tk=512)


def _round_up(x, m):
    return ((x + m - 1) // m) * m


def _pick_tile(dim, target, quantum):
    """Largest multiple of `quantum` <= target that divides `dim`; else dim."""
    if dim <= target:
        return dim
    t = (target // quantum) * quantum
    while t >= quantum:
        if dim % t == 0:
            return t
        t -= quantum
    return dim


# --------------------------------------------------------------------------
# Kernel 1: hn = LayerNorm(GELU(x @ Wd + bd)) * gamma + beta
# grid = (N // tm, H // tk); the K (hidden-in) axis is the reduction.
# --------------------------------------------------------------------------
def prologue_kernel(x_ref, dw_ref, db_ref, g_ref, b_ref, hn_ref, acc_ref):
    k = pl.program_id(1)

    @pl.when(k == 0)
    def _():
        # Initialize the accumulator with the dense bias (saves an epilogue add).
        acc_ref[...] = jnp.broadcast_to(db_ref[...], acc_ref.shape)

    acc_ref[...] += jnp.dot(x_ref[...], dw_ref[...],
                            preferred_element_type=jnp.float32)

    @pl.when(k == pl.num_programs(1) - 1)
    def _():
        h = acc_ref[...]
        # Exact (erf-based) GELU, matching torch.nn.GELU() default.
        h = 0.5 * h * (1.0 + lax.erf(h * _INV_SQRT2))
        # One-pass LayerNorm statistics (biased variance, like torch).
        inv_h = 1.0 / h.shape[-1]
        mean = jnp.sum(h, axis=-1, keepdims=True) * inv_h
        mean_sq = jnp.sum(h * h, axis=-1, keepdims=True) * inv_h
        var = mean_sq - mean * mean
        hn = (h - mean) * lax.rsqrt(var + LN_EPS)
        hn_ref[...] = (hn * g_ref[...] + b_ref[...]).astype(hn_ref.dtype)


# --------------------------------------------------------------------------
# Kernel 2a (preferred): logits = hn @ Wdec + bdec, no K tiling.
# grid = (N // tm, V // tv); hn block index is independent of j -> resident.
# --------------------------------------------------------------------------
def decoder_kernel_simple(hn_ref, w_ref, b_ref, out_ref):
    out_ref[...] = (jnp.dot(hn_ref[...], w_ref[...],
                            preferred_element_type=jnp.float32)
                    + b_ref[...]).astype(out_ref.dtype)


# --------------------------------------------------------------------------
# Kernel 2b (fallback for very large H): K-tiled decoder with f32 accumulator.
# hn block is (tm, H) and resident per i-tile; only the weight tile streams.
# --------------------------------------------------------------------------
def decoder_kernel_ktiled(hn_ref, w_ref, b_ref, out_ref, acc_ref, *, tk):
    k = pl.program_id(2)

    @pl.when(k == 0)
    def _():
        acc_ref[...] = jnp.broadcast_to(b_ref[...], acc_ref.shape)

    off = pl.multiple_of(k * tk, tk)
    acc_ref[...] += jnp.dot(hn_ref[:, pl.ds(off, tk)], w_ref[...],
                            preferred_element_type=jnp.float32)

    @pl.when(k == pl.num_programs(2) - 1)
    def _():
        out_ref[...] = acc_ref[...].astype(out_ref.dtype)


# --------------------------------------------------------------------------
# Parameter preparation: cast weights to the compute dtype and pad the vocab
# dimension ONCE (outside the per-call path), so no per-call f32->bf16 weight
# re-stream and no full-dim fallback for odd vocab sizes.
# --------------------------------------------------------------------------
class LMHeadParams(NamedTuple):
    dense_w: jax.Array   # (H, H)   compute dtype, (in, out)
    dense_b: jax.Array   # (1, H)   f32
    gamma: jax.Array     # (1, H)   f32
    beta: jax.Array      # (1, H)   f32
    dec_w: jax.Array     # (H, Vp)  compute dtype, (in, out), vocab padded
    dec_b: jax.Array     # (1, Vp)  f32
    vocab: int           # original (unpadded) V
    tile_v: int          # vocab tile used for padding / the decoder grid


def prepare_lm_head_params(dense_w, dense_b, ln_gamma, ln_beta, dec_w, dec_b, *,
                           compute_dtype=jnp.bfloat16, config=None):
    cfg = dict(_hw_config()) if config is None else dict(config)
    H, V = dec_w.shape
    tv_t = cfg["tv"]
    if V >= tv_t:
        tv = tv_t
        V_pad = _round_up(V, tv)
    else:
        V_pad = _round_up(V, 128)
        tv = V_pad

    decw = dec_w.astype(compute_dtype)
    decb = dec_b.reshape(1, V).astype(jnp.float32)
    if V_pad != V:
        decw = jnp.pad(decw, ((0, 0), (0, V_pad - V)))
        decb = jnp.pad(decb, ((0, 0), (0, V_pad - V)))

    return LMHeadParams(
        dense_w=dense_w.astype(compute_dtype),
        dense_b=dense_b.reshape(1, H).astype(jnp.float32),
        gamma=ln_gamma.reshape(1, H).astype(jnp.float32),
        beta=ln_beta.reshape(1, H).astype(jnp.float32),
        dec_w=decw, dec_b=decb, vocab=V, tile_v=tv)


# --------------------------------------------------------------------------
# Forward pass.
# --------------------------------------------------------------------------
def lm_head_apply(features, params, *, out_dtype=None,
                  force_ktiled_decoder=False, config=None):
    """features: [B, S, H]; params from prepare_lm_head_params()."""
    cfg = dict(_hw_config()) if config is None else dict(config)
    B, S, H = features.shape
    N = B * S
    Vp = params.dec_w.shape[1]
    V = params.vocab
    tv = params.tile_v
    cdtype = params.dense_w.dtype
    cs = jnp.dtype(cdtype).itemsize
    out_dtype = features.dtype if out_dtype is None else out_dtype
    os_ = jnp.dtype(out_dtype).itemsize
    vmem_limit = cfg["vmem_limit"]

    # ---- token-dimension tiling (pad N so every block is full) ------------
    if N >= cfg["dec_tm"]:
        tm_d = cfg["dec_tm"]          # MXU-aligned (multiple of 256)
        tm_p = cfg["pro_tm"]          # divides tm_d by construction
        N_pad = _round_up(N, tm_d)
    else:
        N_pad = _round_up(max(N, 8), 8)
        tm_d = tm_p = N_pad

    tk_dec = _pick_tile(H, cfg["tk"], 128)

    # ---- prologue VMEM budget check (matters on v7x's 64 MiB) -------------
    def _pro_vmem(tm, tkk):
        return (2 * tm * tkk * cs        # x tiles (double-buffered)
                + 2 * tkk * H * cs       # dense-weight tiles
                + tm * H * 4             # f32 accumulator scratch
                + 2 * tm * H * cs        # hn output tiles
                + 6 * H * 4)             # bias / gamma / beta

    tk_p = tk_dec
    while _pro_vmem(tm_p, tk_p) > 0.8 * vmem_limit:
        new_tk = _pick_tile(H, max(tk_p // 2, 128), 128)
        if new_tk < tk_p:
            tk_p = new_tk
            continue
        if tm_p >= 16 and tm_p % 2 == 0 and N_pad % (tm_p // 2) == 0:
            tm_p //= 2
            continue
        break

    x2d = features.reshape(N, H).astype(cdtype)
    if N_pad != N:
        x2d = jnp.pad(x2d, ((0, N_pad - N), (0, 0)))

    # ---- Stage 1: hn = LayerNorm(GELU(x @ Wd + bd)) ------------------------
    pro_cost = pl.CostEstimate(
        flops=int(2 * N_pad * H * H + 12 * N_pad * H),
        transcendentals=int(N_pad * H + N_pad),
        bytes_accessed=int(N_pad * H * cs + (N_pad // tm_p) * H * H * cs
                           + N_pad * H * cs + 6 * H * 4))
    hn = pl.pallas_call(
        prologue_kernel,
        out_shape=jax.ShapeDtypeStruct((N_pad, H), cdtype),
        grid_spec=pltpu.PrefetchScalarGridSpec(
            num_scalar_prefetch=0,
            grid=(N_pad // tm_p, H // tk_p),
            in_specs=[
                pl.BlockSpec((tm_p, tk_p), lambda i, k: (i, k)),   # x
                pl.BlockSpec((tk_p, H), lambda i, k: (k, 0)),      # dense weight
                pl.BlockSpec((1, H), lambda i, k: (0, 0)),         # dense bias
                pl.BlockSpec((1, H), lambda i, k: (0, 0)),         # ln gamma
                pl.BlockSpec((1, H), lambda i, k: (0, 0)),         # ln beta
            ],
            out_specs=pl.BlockSpec((tm_p, H), lambda i, k: (i, 0)),
            scratch_shapes=[pltpu.VMEM((tm_p, H), jnp.float32)]),
        compiler_params=pltpu.CompilerParams(
            dimension_semantics=("parallel", "arbitrary"),
            vmem_limit_bytes=vmem_limit),
        cost_estimate=pro_cost,
    )(x2d, params.dense_w, params.dense_b, params.gamma, params.beta)

    # ---- Stage 2: logits = hn @ Wdec + bdec --------------------------------
    dec_cost = pl.CostEstimate(
        flops=int(2 * N_pad * H * Vp),
        transcendentals=0,
        bytes_accessed=int(N_pad * H * cs + (N_pad // tm_d) * H * Vp * cs
                           + N_pad * Vp * os_ + Vp * 4))

    # hn block index is independent of the vocab / K axes -> VMEM-resident per
    # i-tile, so the activation is read from HBM exactly once per i-tile.
    nok_bytes = (2 * tm_d * H * cs + 2 * H * tv * cs
                 + 2 * tm_d * tv * os_ + 2 * tv * 4)
    use_nok = (not force_ktiled_decoder) and nok_bytes <= 0.7 * vmem_limit

    if use_nok:
        # Both grid axes "parallel" -> megacore-shardable on v7x.
        logits = pl.pallas_call(
            decoder_kernel_simple,
            out_shape=jax.ShapeDtypeStruct((N_pad, Vp), out_dtype),
            grid_spec=pltpu.PrefetchScalarGridSpec(
                num_scalar_prefetch=0,
                grid=(N_pad // tm_d, Vp // tv),
                in_specs=[
                    pl.BlockSpec((tm_d, H), lambda i, j: (i, 0)),  # hn (resident)
                    pl.BlockSpec((H, tv), lambda i, j: (0, j)),    # dec weight
                    pl.BlockSpec((1, tv), lambda i, j: (0, j)),    # dec bias
                ],
                out_specs=pl.BlockSpec((tm_d, tv), lambda i, j: (i, j))),
            compiler_params=pltpu.CompilerParams(
                dimension_semantics=("parallel", "parallel"),
                vmem_limit_bytes=vmem_limit),
            cost_estimate=dec_cost,
        )(hn, params.dec_w, params.dec_b)
    else:
        logits = pl.pallas_call(
            functools.partial(decoder_kernel_ktiled, tk=tk_dec),
            out_shape=jax.ShapeDtypeStruct((N_pad, Vp), out_dtype),
            grid_spec=pltpu.PrefetchScalarGridSpec(
                num_scalar_prefetch=0,
                grid=(N_pad // tm_d, Vp // tv, H // tk_dec),
                in_specs=[
                    pl.BlockSpec((tm_d, H), lambda i, j, k: (i, 0)),   # resident
                    pl.BlockSpec((tk_dec, tv), lambda i, j, k: (k, j)),
                    pl.BlockSpec((1, tv), lambda i, j, k: (0, j)),
                ],
                out_specs=pl.BlockSpec((tm_d, tv), lambda i, j, k: (i, j)),
                scratch_shapes=[pltpu.VMEM((tm_d, tv), jnp.float32)]),
            compiler_params=pltpu.CompilerParams(
                dimension_semantics=("parallel", "parallel", "arbitrary"),
                vmem_limit_bytes=vmem_limit),
            cost_estimate=dec_cost,
        )(hn, params.dec_w, params.dec_b)

    return logits[:N, :V].reshape(B, S, V)


# --------------------------------------------------------------------------
# Pure-JAX reference (matches the PyTorch module).
# --------------------------------------------------------------------------
def lm_head_ref(features, dense_w, dense_b, ln_gamma, ln_beta, dec_w, dec_b):
    x = features.astype(jnp.float32)
    h = x @ dense_w + dense_b
    h = 0.5 * h * (1.0 + lax.erf(h * _INV_SQRT2))
    mean = jnp.mean(h, axis=-1, keepdims=True)
    var = jnp.mean((h - mean) ** 2, axis=-1, keepdims=True)
    hn = (h - mean) * lax.rsqrt(var + LN_EPS)
    hn = hn * ln_gamma + ln_beta
    return (hn @ dec_w + dec_b).astype(features.dtype)


if __name__ == "__main__":
    # Small shapes; N = 14 and V = 600 deliberately exercise the pad/slice paths.
    B, S, H, V = 2, 7, 256, 600

    key = jax.random.PRNGKey(0)
    k_x, k_dw, k_db, k_g, k_b, k_decw = jax.random.split(key, 6)

    features = jax.random.normal(k_x, (B, S, H), dtype=jnp.float32)

    # PyTorch weight (out, in) is stored pre-transposed to (in, out).
    dense_w = jax.random.normal(k_dw, (H, H), dtype=jnp.float32) * 0.02
    dense_b = jax.random.normal(k_db, (H,), dtype=jnp.float32) * 0.02
    ln_gamma = 1.0 + 0.1 * jax.random.normal(k_g, (H,), dtype=jnp.float32)
    ln_beta = 0.1 * jax.random.normal(k_b, (H,), dtype=jnp.float32)
    dec_w = jax.random.normal(k_decw, (H, V), dtype=jnp.float32) * 0.02
    dec_b = jnp.zeros((V,), dtype=jnp.float32)     # `self.bias` in the module

    ref = lm_head_ref(features, dense_w, dense_b, ln_gamma, ln_beta,
                      dec_w, dec_b)

    # f32 compute path (tight numerical check), no-K decoder.
    p32 = prepare_lm_head_params(dense_w, dense_b, ln_gamma, ln_beta,
                                 dec_w, dec_b, compute_dtype=jnp.float32)
    out_f32 = jax.block_until_ready(lm_head_apply(features, p32))
    assert out_f32.shape == (B, S, V)
    assert jnp.max(jnp.abs(out_f32 - ref)) < 2e-3, "f32 path mismatch"

    # f32 compute path, forced K-tiled decoder (exercises the accumulator path).
    cfg_k = dict(_hw_config())
    cfg_k["tk"] = 128
    out_f32_k = jax.block_until_ready(
        lm_head_apply(features, p32, force_ktiled_decoder=True, config=cfg_k))
    assert jnp.max(jnp.abs(out_f32_k - ref)) < 2e-3, "f32 K-tiled path mismatch"

    # bf16 operands + f32 MXU accumulation (production config).
    pbf16 = prepare_lm_head_params(dense_w, dense_b, ln_gamma, ln_beta,
                                   dec_w, dec_b, compute_dtype=jnp.bfloat16)
    out_bf16 = jax.block_until_ready(lm_head_apply(features, pbf16))
    assert out_bf16.shape == (B, S, V)
    assert jnp.max(jnp.abs(out_bf16.astype(jnp.float32) - ref)) < 5e-2, \
        "bf16 path mismatch"

    print("KERNEL_OK")
</pallas_src>

<mosaic_0001>
module attributes {stable_mosaic.version = 11 : i64} {
  func.func @prologue_kernel(%arg0: i32, %arg1: i32, %arg2: memref<16x256xf32, #tpu.memory_space<vmem>>, %arg3: memref<256x256xf32, #tpu.memory_space<vmem>>, %arg4: memref<1x256xf32, #tpu.memory_space<vmem>>, %arg5: memref<1x256xf32, #tpu.memory_space<vmem>>, %arg6: memref<1x256xf32, #tpu.memory_space<vmem>>, %arg7: memref<16x256xf32, #tpu.memory_space<vmem>>, %arg8: memref<16x256xf32, #tpu.memory_space<vmem>>) attributes {dimension_semantics = [#tpu.dimension_semantics<parallel>, #tpu.dimension_semantics<arbitrary>], iteration_bounds = array<i64: 1, 1>, scalar_prefetch = 0 : i64, scratch_operands = 1 : i64, tpu.core_type = #tpu.core_type<tc>, window_params = [{transform_indices = @transform_0, window_bounds = array<i64: 16, 256>}, {transform_indices = @transform_1, window_bounds = array<i64: 256, 256>}, {pipeline_mode = #tpu.pipeline_mode<synchronous>, transform_indices = @transform_2, window_bounds = array<i64: 1, 256>}, {pipeline_mode = #tpu.pipeline_mode<synchronous>, transform_indices = @transform_3, window_bounds = array<i64: 1, 256>}, {pipeline_mode = #tpu.pipeline_mode<synchronous>, transform_indices = @transform_4, window_bounds = array<i64: 1, 256>}, {transform_indices = @transform_5, window_bounds = array<i64: 16, 256>}]} {
    %c0_i32 = arith.constant 0 : i32
    %0 = arith.cmpi eq, %arg1, %c0_i32 : i32
    %1 = arith.extui %0 : i1 to i32
    %c0_i32_0 = arith.constant 0 : i32
    %2 = arith.cmpi ne, %1, %c0_i32_0 : i32
    scf.if %2 {
      %c0_10 = arith.constant 0 : index
      %c0_11 = arith.constant 0 : index
      %12 = vector.load %arg4[%c0_10, %c0_11] : memref<1x256xf32, #tpu.memory_space<vmem>>, vector<1x256xf32>
      %13 = vector.shape_cast %12 : vector<1x256xf32> to vector<1x256xf32>
      %14 = vector.broadcast %13 : vector<1x256xf32> to vector<16x256xf32>
      %c0_12 = arith.constant 0 : index
      %c0_13 = arith.constant 0 : index
      %15 = vector.load %arg8[%c0_12, %c0_13] : memref<16x256xf32, #tpu.memory_space<vmem>>, vector<16x256xf32>
      tpu.vector_store %arg8[%c0_12, %c0_13], %14 {strides = array<i32>} : memref<16x256xf32, #tpu.memory_space<vmem>>, vector<16x256xf32>,
    } else {
    }
    %c0 = arith.constant 0 : index
    %c0_1 = arith.constant 0 : index
    %3 = vector.load %arg8[%c0, %c0_1] : memref<16x256xf32, #tpu.memory_space<vmem>>, vector<16x256xf32>
    %c0_2 = arith.constant 0 : index
    %c0_3 = arith.constant 0 : index
    %4 = vector.load %arg2[%c0_2, %c0_3] : memref<16x256xf32, #tpu.memory_space<vmem>>, vector<16x256xf32>
    %c0_4 = arith.constant 0 : index
    %c0_5 = arith.constant 0 : index
    %5 = vector.load %arg3[%c0_4, %c0_5] : memref<256x256xf32, #tpu.memory_space<vmem>>, vector<256x256xf32>
    %cst = arith.constant dense<0.000000e+00> : vector<16x256xf32>
    %6 = tpu.matmul %4, %5, %cst {dimension_numbers = #tpu.dot_dimension_numbers<[1], [0], [0], [1], [0, 0, 1, 1], [], []>} : vector<16x256xf32>, vector<256x256xf32>, vector<16x256xf32> -> vector<16x256xf32>
    %7 = arith.addf %3, %6 : vector<16x256xf32>
    %c0_6 = arith.constant 0 : index
    %c0_7 = arith.constant 0 : index
    %8 = vector.load %arg8[%c0_6, %c0_7] : memref<16x256xf32, #tpu.memory_space<vmem>>, vector<16x256xf32>
    tpu.vector_store %arg8[%c0_6, %c0_7], %7 {strides = array<i32>} : memref<16x256xf32, #tpu.memory_space<vmem>>, vector<16x256xf32>,
    %c0_i32_8 = arith.constant 0 : i32
    %9 = arith.cmpi eq, %arg1, %c0_i32_8 : i32
    %10 = arith.extui %9 : i1 to i32
    %c0_i32_9 = arith.constant 0 : i32
    %11 = arith.cmpi ne, %10, %c0_i32_9 : i32
    scf.if %11 {
      %c0_10 = arith.constant 0 : index
      %c0_11 = arith.constant 0 : index
      %12 = vector.load %arg8[%c0_10, %c0_11] : memref<16x256xf32, #tpu.memory_space<vmem>>, vector<16x256xf32>
      %cst_12 = arith.constant 5.000000e-01 : f32
      %13 = vector.broadcast %cst_12 : f32 to vector<16x256xf32>
      %14 = arith.mulf %13, %12 : vector<16x256xf32>
      %cst_13 = arith.constant 0.707106769 : f32
      %15 = vector.broadcast %cst_13 : f32 to vector<16x256xf32>
      %16 = arith.mulf %12, %15 : vector<16x256xf32>
      %17 = math.erf %16 : vector<16x256xf32>
      %cst_14 = arith.constant 1.000000e+00 : f32
      %18 = vector.broadcast %cst_14 : f32 to vector<16x256xf32>
      %19 = arith.addf %18, %17 : vector<16x256xf32>
      %20 = arith.mulf %14, %19 : vector<16x256xf32>
      %cst_15 = arith.constant dense<0.000000e+00> : vector<16xf32>
      %21 = vector.multi_reduction <add>, %20, %cst_15 [1] : vector<16x256xf32> to vector<16xf32>
      %22 = vector.shape_cast %21 : vector<16xf32> to vector<16x1xf32>
      %cst_16 = arith.constant 3.906250e-03 : f32
      %23 = vector.broadcast %cst_16 : f32 to vector<16x1xf32>
      %24 = arith.mulf %22, %23 : vector<16x1xf32>
      %25 = arith.mulf %20, %20 : vector<16x256xf32>
      %cst_17 = arith.constant dense<0.000000e+00> : vector<16xf32>
      %26 = vector.multi_reduction <add>, %25, %cst_17 [1] : vector<16x256xf32> to vector<16xf32>
      %27 = vector.shape_cast %26 : vector<16xf32> to vector<16x1xf32>
      %cst_18 = arith.constant 3.906250e-03 : f32
      %28 = vector.broadcast %cst_18 : f32 to vector<16x1xf32>
      %29 = arith.mulf %27, %28 : vector<16x1xf32>
      %30 = arith.mulf %24, %24 : vector<16x1xf32>
      %31 = arith.subf %29, %30 : vector<16x1xf32>
      %32 = vector.broadcast %24 : vector<16x1xf32> to vector<16x256xf32>
      %33 = arith.subf %20, %32 : vector<16x256xf32>
      %cst_19 = arith.constant 9.99999974E-6 : f32
      %34 = vector.broadcast %cst_19 : f32 to vector<16x1xf32>
      %35 = arith.addf %31, %34 : vector<16x1xf32>
      %36 = math.rsqrt %35 : vector<16x1xf32>
      %37 = vector.broadcast %36 : vector<16x1xf32> to vector<16x256xf32>
      %38 = arith.mulf %33, %37 : vector<16x256xf32>
      %c0_20 = arith.constant 0 : index
      %c0_21 = arith.constant 0 : index
      %39 = vector.load %arg5[%c0_20, %c0_21] : memref<1x256xf32, #tpu.memory_space<vmem>>, vector<1x256xf32>
      %40 = vector.broadcast %39 : vector<1x256xf32> to vector<16x256xf32>
      %41 = arith.mulf %38, %40 : vector<16x256xf32>
      %c0_22 = arith.constant 0 : index
      %c0_23 = arith.constant 0 : index
      %42 = vector.load %arg6[%c0_22, %c0_23] : memref<1x256xf32, #tpu.memory_space<vmem>>, vector<1x256xf32>
      %43 = vector.broadcast %42 : vector<1x256xf32> to vector<16x256xf32>
      %44 = arith.addf %41, %43 : vector<16x256xf32>
      %c0_24 = arith.constant 0 : index
      %c0_25 = arith.constant 0 : index
      %45 = vector.load %arg7[%c0_24, %c0_25] : memref<16x256xf32, #tpu.memory_space<vmem>>, vector<16x256xf32>
      tpu.vector_store %arg7[%c0_24, %c0_25], %44 {strides = array<i32>} : memref<16x256xf32, #tpu.memory_space<vmem>>, vector<16x256xf32>,
    } else {
    }
    return
  }
  func.func @transform_0(%arg0: i32, %arg1: i32) -> (i32, i32) {
    %c0_i32 = arith.constant 0 : i32
    return %arg0, %arg1 : i32, i32
  }
  func.func @transform_1(%arg0: i32, %arg1: i32) -> (i32, i32) {
    %c0_i32 = arith.constant 0 : i32
    %c0_i32_0 = arith.constant 0 : i32
    return %arg1, %c0_i32 : i32, i32
  }
  func.func @transform_2(%arg0: i32, %arg1: i32) -> (i32, i32) {
    %c0_i32 = arith.constant 0 : i32
    %c0_i32_0 = arith.constant 0 : i32
    %c0_i32_1 = arith.constant 0 : i32
    return %c0_i32, %c0_i32_0 : i32, i32
  }
  func.func @transform_3(%arg0: i32, %arg1: i32) -> (i32, i32) {
    %c0_i32 = arith.constant 0 : i32
    %c0_i32_0 = arith.constant 0 : i32
    %c0_i32_1 = arith.constant 0 : i32
    return %c0_i32, %c0_i32_0 : i32, i32
  }
  func.func @transform_4(%arg0: i32, %arg1: i32) -> (i32, i32) {
    %c0_i32 = arith.constant 0 : i32
    %c0_i32_0 = arith.constant 0 : i32
    %c0_i32_1 = arith.constant 0 : i32
    return %c0_i32, %c0_i32_0 : i32, i32
  }
  func.func @transform_5(%arg0: i32, %arg1: i32) -> (i32, i32) {
    %c0_i32 = arith.constant 0 : i32
    %c0_i32_0 = arith.constant 0 : i32
    return %arg0, %c0_i32 : i32, i32
  }
}

</mosaic_0001>

<bundles_post_ra>
// kernel: tpu_custom_call.1
= control target key start
LH: loop header
LB: loop body
LE: loop exit
PB: predicated region body
PF: predicated region fallthrough
CT: control target
= control target key end

     0   :  { %10 = vsyncpa [#allocation4], 0  ;;  %s627_s0 = inlined_call_operand.hbm [shape: f32[16,256], index: 0, kind: input, shape index: {}]   ;;  %s628_s1 = inlined_call_operand.hbm [shape: f32[256,256], index: 1, kind: input, shape index: {}]   ;;  %s629_s2 = inlined_call_operand.vmem [shape: f32[1,256], index: 2, kind: input, shape index: {}]   ;;  %s630_s3 = inlined_call_operand.vmem [shape: f32[1,256], index: 3, kind: input, shape index: {}]   ;;  %s631_s4 = inlined_call_operand.vmem [shape: f32[1,256], index: 4, kind: input, shape index: {}]   ;;  %s632_s5 = inlined_call_operand.hbm [shape: f32[16,256], index: 5, kind: output, shape index: {}]  }
   0x1   :  { %11 = vsyncpa [#allocation7], 0 }
   0x2   :  { %12 = vsyncpa [#allocation5], 0  ;;  %s528_s18 = smov [#allocation3]   ;;  %s456_s22 = scalar_lea.hbm %s627_s0, 512 }
   0x3   :  { %s18_s19 = sshll.u32 %s528_s18, 4  ;;  %p457_p0 = scmp.ne.s32.totalorder %s627_s0, %s456_s22  ;;  %s19_s19 = int_to_ptr.vmem [resolvable:$true] %s18_s19 }
   0x4   :  { %p460_p1 = scmp.lt.u32.totalorder %s456_s22, %s627_s0 }
   0x6   :  { %p462_p2 = pnand %p460_p1, %p457_p0 }
   0x8   :  { %465 = shalt.err (!%p462_p2)
}
   0x9   :  { %s466_s27 = scalar_lea.vmem %s19_s19, 512  ;;  %p471_p4 = scmp.lt.s32.totalorder %s19_s19, %s19_s19 }
   0xa   :  { %p467_p3 = scmp.ne.s32.totalorder %s19_s19, %s466_s27  ;;  %p472_p5 = scmp.lt.s32.totalorder %s466_s27, %s466_s27 }
   0xc   :  { %p473_p6 = por %p472_p5, %p471_p4 }
   0xe   :  { %p474_p7 = pnand %p473_p6, %p467_p3 }
  0x10   :  { %477 = shalt.err (!%p474_p7)
}
  0x11   :  { %s529_s28 = smov 256   ;;  %s530_s29 = smov 16  }
  0x12   :  { %24 = dma.hbm_to_vmem [thread:$0]  %s627_s0, 512, %s19_s19, [#allocation4], %s529_s28, %s529_s28, %s530_s29  }
  0x13   :  { %s531_s7 = smov [#allocation6]   ;;  %s478_s11 = scalar_lea.hbm %s628_s1, 8192 }
  0x14   :  { %s30_s8 = sshll.u32 %s531_s7, 4  ;;  %p479_p8 = scmp.ne.s32.totalorder %s628_s1, %s478_s11  ;;  %s31_s8 = int_to_ptr.vmem [resolvable:$true] %s30_s8 }
  0x15   :  { %p482_p9 = scmp.lt.u32.totalorder %s478_s11, %s628_s1 }
  0x17   :  { %p484_p10 = pnand %p482_p9, %p479_p8 }
  0x19   :  { %487 = shalt.err (!%p484_p10)
}
  0x1a   :  { %s488_s16 = scalar_lea.vmem %s31_s8, 8192  ;;  %p493_p12 = scmp.lt.s32.totalorder %s31_s8, %s31_s8 }
  0x1b   :  { %p489_p11 = scmp.ne.s32.totalorder %s31_s8, %s488_s16  ;;  %p494_p13 = scmp.lt.s32.totalorder %s488_s16, %s488_s16 }
  0x1d   :  { %p495_p0 = por %p494_p13, %p493_p12 }
  0x1f   :  { %p496_p1 = pnand %p495_p0, %p489_p11 }
  0x21   :  { %499 = shalt.err (!%p496_p1)
}
  0x22   :  { %36 = dma.hbm_to_vmem [thread:$0]  %s628_s1, 8192, %s31_s8, [#allocation7], %s529_s28, %s529_s28, %s530_s29  }
  0x23   :  { %522 = dma.done.wait [#allocation4], 512  }
  0x24   :  { %523 = vsyncadd [#allocation4], 4294966784 }
  0x25   :  { %524 = dma.done.wait [#allocation7], 8192  }
  0x26   :  { %525 = vsyncadd [#allocation7], 4294959104  ;;  %v78_v0 = vld [vmem:[#allocation6 + $0x8] sm:$0xff]  ;;  %v80_v1 = vld [vmem:[#allocation6 + $0x18] sm:$0xff] }
  0x27   :  { %v77_v2 = vld [vmem:[#allocation6] sm:$0xff]  ;;  %v343_v3 = vpack.c.bf16 %v80_v1, %v78_v0  ;;  %v79_v4 = vld [vmem:[#allocation6 + $0x10] sm:$0xff]  ;;  %v82_v5 = vld [vmem:[#allocation6 + $0x28] sm:$0xff] }
  0x28   :  { %v84_v6 = vld [vmem:[#allocation6 + $0x38] sm:$0xff]  ;;  %v345_v7 = vpack.c.bf16 %v79_v4, %v77_v2  ;;  %v81_v9 = vld [vmem:[#allocation6 + $0x20] sm:$0xff]  ;;  %v83_v10 = vld [vmem:[#allocation6 + $0x30] sm:$0xff] }
  0x29   :  { %v347_v8 = vpack.c.bf16 %v84_v6, %v82_v5  ;;  %v86_v11 = vld [vmem:[#allocation6 + $0x48] sm:$0xff]  ;;  %344 = vmatprep.subr.bf16.mxu0 %v343_v3  ;;  %407 = vmatprep.subr.bf16.mxu1 %v343_v3  ;;  %v88_v12 = vld [vmem:[#allocation6 + $0x58] sm:$0xff]  ;;  %v349_v13 = vpack.c.bf16 %v83_v10, %v81_v9  ;;  %v85_v15 = vld [vmem:[#allocation6 + $0x40] sm:$0xff] }
  0x2a   :  { %346 = vmatpush1.bf16.msra.mxu0 %v345_v7  ;;  %423 = vmatpush1.bf16.msra.mxu1 %v345_v7  ;;  %v351_v14 = vpack.c.bf16 %v88_v12, %v86_v11  ;;  %v87_v16 = vld [vmem:[#allocation6 + $0x50] sm:$0xff]  ;;  %v90_v17 = vld [vmem:[#allocation6 + $0x68] sm:$0xff]  ;;  %v92_v18 = vld [vmem:[#allocation6 + $0x78] sm:$0xff] }
  0x2b   :  { %348 = vmatprep.subr.bf16.mxu0 %v347_v8  ;;  %408 = vmatprep.subr.bf16.mxu1 %v347_v8  ;;  %v353_v19 = vpack.c.bf16 %v87_v16, %v85_v15  ;;  %v355_v20 = vpack.c.bf16 %v92_v18, %v90_v17  ;;  %v89_v21 = vld [vmem:[#allocation6 + $0x60] sm:$0xff]  ;;  %v91_v22 = vld [vmem:[#allocation6 + $0x70] sm:$0xff]  ;;  %v94_v23 = vld [vmem:[#allocation6 + $0x88] sm:$0xff] }
  0x2c   :  { %v96_v24 = vld [vmem:[#allocation6 + $0x98] sm:$0xff]  ;;  %v357_v25 = vpack.c.bf16 %v91_v22, %v89_v21  ;;  %v93_v27 = vld [vmem:[#allocation6 + $0x80] sm:$0xff]  ;;  %v95_v28 = vld [vmem:[#allocation6 + $0x90] sm:$0xff] }
  0x2d   :  { %v359_v26 = vpack.c.bf16 %v96_v24, %v94_v23  ;;  %v98_v29 = vld [vmem:[#allocation6 + $0xa8] sm:$0xff]  ;;  %v100_v30 = vld [vmem:[#allocation6 + $0xb8] sm:$0xff]  ;;  %v361_v31 = vpack.c.bf16 %v95_v28, %v93_v27  ;;  %v97_v33 = vld [vmem:[#allocation6 + $0xa0] sm:$0xff] }
  0x2e   :  { %350 = vmatpush1.bf16.msra.mxu0 %v349_v13  ;;  %424 = vmatpush1.bf16.msra.mxu1 %v349_v13  ;;  %v363_v32 = vpack.c.bf16 %v100_v30, %v98_v29  ;;  %v99_v34 = vld [vmem:[#allocation6 + $0xb0] sm:$0xff]  ;;  %v102_v35 = vld [vmem:[#allocation6 + $0xc8] sm:$0xff]  ;;  %v104_v36 = vld [vmem:[#allocation6 + $0xd8] sm:$0xff] }
  0x2f   :  { %352 = vmatprep.subr.bf16.mxu0 %v351_v14  ;;  %409 = vmatprep.subr.bf16.mxu1 %v351_v14  ;;  %v365_v37 = vpack.c.bf16 %v99_v34, %v97_v33  ;;  %v101_v38 = vld [vmem:[#allocation6 + $0xc0] sm:$0xff]  ;;  %v367_v39 = vpack.c.bf16 %v104_v36, %v102_v35  ;;  %v103_v40 = vld [vmem:[#allocation6 + $0xd0] sm:$0xff]  ;;  %v74_v41 = vld [vmem:[#allocation3 + $0x8] sm:$0xff]  ;;  %v55_v36 = vlaneseq }
  0x30   :  { %v76_v42 = vld [vmem:[#allocation3 + $0x18] sm:$0xff]  ;;  %v106_v43 = vld [vmem:[#allocation6 + $0xe8] sm:$0xff]  ;;  %205 = vmatprep.mubr.f32.mxu0 %v74_v41  ;;  %v369_v45 = vpack.c.bf16 %v103_v40, %v101_v38  ;;  %v105_v47 = vld [vmem:[#allocation6 + $0xe0] sm:$0xff] }
  0x31   :  { %v108_v44 = vld [vmem:[#allocation6 + $0xf8] sm:$0xff]  ;;  %211 = vmatprep.mubr.f32.mxu1 %v76_v42  ;;  %v107_v48 = vld [vmem:[#allocation6 + $0xf0] sm:$0xff]  ;;  %v110_v49 = vld [vmem:[#allocation6 + $0x108] sm:$0xff] }
  0x32   :  { %354 = vmatpush1.bf16.msra.mxu0 %v353_v19  ;;  %425 = vmatpush1.bf16.msra.mxu1 %v353_v19  ;;  %v371_v46 = vpack.c.bf16 %v108_v44, %v106_v43  ;;  %v112_v50 = vld [vmem:[#allocation6 + $0x118] sm:$0xff]  ;;  %v373_v51 = vpack.c.bf16 %v107_v48, %v105_v47  ;;  %v109_v53 = vld [vmem:[#allocation6 + $0x100] sm:$0xff]  ;;  %v111_v54 = vld [vmem:[#allocation6 + $0x110] sm:$0xff] }
  0x33   :  { %356 = vmatprep.subr.bf16.mxu0 %v355_v20  ;;  %410 = vmatprep.subr.bf16.mxu1 %v355_v20  ;;  %v375_v52 = vpack.c.bf16 %v112_v50, %v110_v49  ;;  %v114_v55 = vld [vmem:[#allocation6 + $0x128] sm:$0xff]  ;;  %v116_v56 = vld [vmem:[#allocation6 + $0x138] sm:$0xff]  ;;  %v377_v57 = vpack.c.bf16 %v111_v54, %v109_v53  ;;  %v113_v59 = vld [vmem:[#allocation6 + $0x120] sm:$0xff] }
  0x34   :  { %v379_v58 = vpack.c.bf16 %v116_v56, %v114_v55  ;;  %v115_v60 = vld [vmem:[#allocation6 + $0x130] sm:$0xff]  ;;  %v118_v61 = vld [vmem:[#allocation6 + $0x148] sm:$0xff]  ;;  %v120_v62 = vld [vmem:[#allocation6 + $0x158] sm:$0xff] }
  0x35   :  { %v381_v63 = vpack.c.bf16 %v115_v60, %v113_v59  ;;  %v383_v0 = vpack.c.bf16 %v120_v62, %v118_v61  ;;  %v117_v1 = vld [vmem:[#allocation6 + $0x140] sm:$0xff]  ;;  %v119_v2 = vld [vmem:[#allocation6 + $0x150] sm:$0xff]  ;;  %v122_v3 = vld [vmem:[#allocation6 + $0x168] sm:$0xff] }
  0x36   :  { %358 = vmatpush1.bf16.msra.mxu0 %v357_v25  ;;  %426 = vmatpush1.bf16.msra.mxu1 %v357_v25  ;;  %v124_v4 = vld [vmem:[#allocation6 + $0x178] sm:$0xff]  ;;  %v385_v5 = vpack.c.bf16 %v119_v2, %v117_v1  ;;  %v121_v7 = vld [vmem:[#allocation6 + $0x160] sm:$0xff]  ;;  %v123_v8 = vld [vmem:[#allocation6 + $0x170] sm:$0xff] }
  0x37   :  { %360 = vmatprep.subr.bf16.mxu0 %v359_v26  ;;  %411 = vmatprep.subr.bf16.mxu1 %v359_v26  ;;  %v387_v6 = vpack.c.bf16 %v124_v4, %v122_v3  ;;  %v126_v9 = vld [vmem:[#allocation6 + $0x188] sm:$0xff]  ;;  %v128_v10 = vld [vmem:[#allocation6 + $0x198] sm:$0xff]  ;;  %v389_v11 = vpack.c.bf16 %v123_v8, %v121_v7  ;;  %v125_v13 = vld [vmem:[#allocation6 + $0x180] sm:$0xff] }
  0x38   :  { %v391_v12 = vpack.c.bf16 %v128_v10, %v126_v9  ;;  %v127_v14 = vld [vmem:[#allocation6 + $0x190] sm:$0xff]  ;;  %v130_v15 = vld [vmem:[#allocation6 + $0x1a8] sm:$0xff]  ;;  %v132_v16 = vld [vmem:[#allocation6 + $0x1b8] sm:$0xff] }
  0x39   :  { %v393_v17 = vpack.c.bf16 %v127_v14, %v125_v13  ;;  %v395_v18 = vpack.c.bf16 %v132_v16, %v130_v15  ;;  %v129_v19 = vld [vmem:[#allocation6 + $0x1a0] sm:$0xff]  ;;  %v131_v20 = vld [vmem:[#allocation6 + $0x1b0] sm:$0xff]  ;;  %v134_v21 = vld [vmem:[#allocation6 + $0x1c8] sm:$0xff] }
  0x3a   :  { %362 = vmatpush1.bf16.msra.mxu0 %v361_v31  ;;  %427 = vmatpush1.bf16.msra.mxu1 %v361_v31  ;;  %v136_v22 = vld [vmem:[#allocation6 + $0x1d8] sm:$0xff]  ;;  %v397_v23 = vpack.c.bf16 %v131_v20, %v129_v19  ;;  %v133_v25 = vld [vmem:[#allocation6 + $0x1c0] sm:$0xff]  ;;  %v135_v26 = vld [vmem:[#allocation6 + $0x1d0] sm:$0xff] }
  0x3b   :  { %364 = vmatprep.subr.bf16.mxu0 %v363_v32  ;;  %412 = vmatprep.subr.bf16.mxu1 %v363_v32  ;;  %v399_v24 = vpack.c.bf16 %v136_v22, %v134_v21  ;;  %v138_v27 = vld [vmem:[#allocation6 + $0x1e8] sm:$0xff]  ;;  %v140_v28 = vld [vmem:[#allocation6 + $0x1f8] sm:$0xff]  ;;  %v401_v29 = vpack.c.bf16 %v135_v26, %v133_v25  ;;  %v137_v31 = vld [vmem:[#allocation6 + $0x1e0] sm:$0xff] }
  0x3c   :  { %v403_v30 = vpack.c.bf16 %v140_v28, %v138_v27  ;;  %v139_v32 = vld [vmem:[#allocation6 + $0x1f0] sm:$0xff]  ;;  %v73_v34 = vld [vmem:[#allocation3] sm:$0xff] }
  0x3d   :  { %v405_v33 = vpack.c.bf16 %v139_v32, %v137_v31  ;;  %v75_v35 = vld [vmem:[#allocation3 + $0x10] sm:$0xff] }
  0x3e   :  { %366 = vmatpush1.bf16.msra.mxu0 %v365_v37  ;;  %428 = vmatpush1.bf16.msra.mxu1 %v365_v37  ;;  %v56_v37 = vshrl.u32 %v55_v36, 7 }
  0x3f   :  { %368 = vmatprep.subr.bf16.mxu0 %v367_v39  ;;  %413 = vmatprep.subr.bf16.mxu1 %v367_v39  ;;  %v53_v39 = vld [vmem:[%s629_s2] sm:$0x3] }
  0x40   :  { %v593_v38 = vsub.s32 0, %v56_v37  ;;  %v598_v40 = vsub.s32 1, %v56_v37 }
  0x42   :  { %370 = vmatpush1.bf16.msra.mxu0 %v369_v45  ;;  %429 = vmatpush1.bf16.msra.mxu1 %v369_v45  ;;  %v58_v41 = vrot.slane %v53_v39, %v593_v38  ;;  %v62_v42 = vrot.slane %v53_v39, %v598_v40 }
  0x43   :  { %372 = vmatprep.subr.bf16.mxu0 %v371_v46  ;;  %414 = vmatprep.subr.bf16.mxu1 %v371_v46 }
  0x46   :  { %374 = vmatpush1.bf16.msra.mxu0 %v373_v51  ;;  %430 = vmatpush1.bf16.msra.mxu1 %v373_v51 }
  0x47   :  { %376 = vmatprep.subr.bf16.mxu0 %v375_v52  ;;  %415 = vmatprep.subr.bf16.mxu1 %v375_v52 }
  0x4a   :  { %378 = vmatpush1.bf16.msra.mxu0 %v377_v57  ;;  %431 = vmatpush1.bf16.msra.mxu1 %v377_v57 }
  0x4b   :  { %380 = vmatprep.subr.bf16.mxu0 %v379_v58  ;;  %416 = vmatprep.subr.bf16.mxu1 %v379_v58 }
  0x4e   :  { %382 = vmatpush1.bf16.msra.mxu0 %v381_v63  ;;  %432 = vmatpush1.bf16.msra.mxu1 %v381_v63 }
  0x4f   :  { %384 = vmatprep.subr.bf16.mxu0 %v383_v0  ;;  %417 = vmatprep.subr.bf16.mxu1 %v383_v0 }
  0x52   :  { %386 = vmatpush1.bf16.msra.mxu0 %v385_v5  ;;  %433 = vmatpush1.bf16.msra.mxu1 %v385_v5 }
  0x53   :  { %388 = vmatprep.subr.bf16.mxu0 %v387_v6  ;;  %418 = vmatprep.subr.bf16.mxu1 %v387_v6 }
  0x56   :  { %390 = vmatpush1.bf16.msra.mxu0 %v389_v11  ;;  %434 = vmatpush1.bf16.msra.mxu1 %v389_v11 }
  0x57   :  { %392 = vmatprep.subr.bf16.mxu0 %v391_v12  ;;  %419 = vmatprep.subr.bf16.mxu1 %v391_v12 }
  0x5a   :  { %394 = vmatpush1.bf16.msra.mxu0 %v393_v17  ;;  %435 = vmatpush1.bf16.msra.mxu1 %v393_v17 }
  0x5b   :  { %396 = vmatprep.subr.bf16.mxu0 %v395_v18  ;;  %420 = vmatprep.subr.bf16.mxu1 %v395_v18 }
  0x5e   :  { %398 = vmatpush1.bf16.msra.mxu0 %v397_v23  ;;  %436 = vmatpush1.bf16.msra.mxu1 %v397_v23 }
  0x5f   :  { %400 = vmatprep.subr.bf16.mxu0 %v399_v24  ;;  %421 = vmatprep.subr.bf16.mxu1 %v399_v24 }
  0x62   :  { %402 = vmatpush1.bf16.msra.mxu0 %v401_v29  ;;  %437 = vmatpush1.bf16.msra.mxu1 %v401_v29  ;;  %v289_v29 = vld [vmem:[%s630_s3] sm:$0x3]  ;;  %s532_s3 = smov [#allocation8]  }
  0x63   :  { %404 = vmatprep.subr.bf16.mxu0 %v403_v30  ;;  %422 = vmatprep.subr.bf16.mxu1 %v403_v30  ;;  %v305_v30 = vld [vmem:[%s631_s4] sm:$0x3]  ;;  %v294_v31 = vrot.slane %v289_v29, %v593_v38  ;;  %v298_v32 = vrot.slane %v289_v29, %v598_v40  ;;  %s330_s4 = sshll.u32 %s532_s3, 4  ;;  %s331_s4 = int_to_ptr.vmem [resolvable:$true] %s330_s4 }
  0x64   :  { %v310_v36 = vrot.slane %v305_v30, %v593_v38  ;;  %v314_v37 = vrot.slane %v305_v30, %v598_v40  ;;  %s500_s22 = scalar_lea.vmem %s331_s4, 512  ;;  %p505_p3 = scmp.lt.s32.totalorder %s331_s4, %s331_s4 }
  0x65   :  { %p501_p2 = scmp.ne.s32.totalorder %s331_s4, %s500_s22  ;;  %p506_p4 = scmp.lt.s32.totalorder %s500_s22, %s500_s22 }
  0x66   :  { %406 = vmatpush1.bf16.msra.mxu0 %v405_v33  ;;  %438 = vmatpush1.bf16.msra.mxu1 %v405_v33 }
  0x67   :  { %p507_p5 = por %p506_p4, %p505_p3 }
  0x69   :  { %206 = vmatmul.mubr.f32.vlgmr.msra.gmra.mrb[0].mxu0 %v73_v34  ;;  %212 = vmatmul.mubr.f32.vlgmr.msra.gmra.mrb[0].mxu1 %v75_v35  ;;  %p508_p6 = pnand %p507_p5, %p501_p2 }
 0x13c   :  { %v207_v43 = vpop.f32.mrb[0].mxu0  ;;  %v213_v44 = vpop.f32.mrb[0].mxu1 }
 0x13d   :  { %v218_v45 = vadd.f32 %v207_v43, %v58_v41  ;;  %v220_v46 = vadd.f32 %v213_v44, %v58_v41  ;;  %v209_v47 = vpop.f32.mrb[1].mxu0  ;;  %v215_v48 = vpop.f32.mrb[1].mxu1 }
 0x13e   :  { %v219_v49 = vadd.f32 %v209_v47, %v62_v42  ;;  %v221_v50 = vadd.f32 %v215_v48, %v62_v42 }
 0x13f   :  { %v237_v51 = vmul.f32 0.70710677, %v218_v45  ;;  %v239_v52 = vmul.f32 0.70710677, %v220_v46  ;;  %v233_v57 = vmul.f32 0.5, %v218_v45  ;;  %v235_v62 = vmul.f32 0.5, %v220_v46 }
 0x140   :  { %v238_v53 = vmul.f32 0.70710677, %v219_v49  ;;  %v240_v54 = vmul.f32 0.70710677, %v221_v50  ;;  %v234_v63 = vmul.f32 0.5, %v219_v49  ;;  %v236_v2 = vmul.f32 0.5, %v221_v50 }
 0x141   :  { %444 = verf.f32 %v237_v51 }
 0x142   :  { %446 = verf.f32 %v239_v52 }
 0x143   :  { %448 = verf.f32 %v238_v53 }
 0x144   :  { %450 = verf.f32 %v240_v54 }
 0x14b   :  { %v445_v55 = vpop.eup %444 }
 0x14c   :  { %v447_v56 = vpop.eup %446  ;;  %v245_v58 = vadd.f32 1.0, %v445_v55 }
 0x14d   :  { %v449_v59 = vpop.eup %448  ;;  %v247_v60 = vadd.f32 1.0, %v447_v56 }
 0x14e   :  { %v451_v61 = vpop.eup %450  ;;  %v246_v0 = vadd.f32 1.0, %v449_v59  ;;  %v249_v1 = vmul.f32 %v245_v58, %v233_v57 }
 0x14f   :  { %v248_v3 = vadd.f32 1.0, %v451_v61  ;;  %v251_v4 = vmul.f32 %v247_v60, %v235_v62 }
 0x150   :  { %v250_v5 = vmul.f32 %v246_v0, %v234_v63  ;;  %v261_v6 = vmul.f32 %v249_v1, %v249_v1 }
 0x151   :  { %v252_v7 = vmul.f32 %v248_v3, %v236_v2  ;;  %v263_v11 = vmul.f32 %v251_v4, %v251_v4 }
 0x152   :  { %v253_v8 = vadd.f32 %v250_v5, %v249_v1  ;;  %v262_v9 = vmul.f32 %v250_v5, %v250_v5 }
 0x153   :  { %v264_v12 = vmul.f32 %v252_v7, %v252_v7  ;;  %v256_v13 = vadd.f32 %v252_v7, %v251_v4 }
 0x154   :  { %254 = vadd.xlane.f32.xlu0 %v253_v8  ;;  %v265_v10 = vadd.f32 %v262_v9, %v261_v6 }
 0x155   :  { %v268_v14 = vadd.f32 %v264_v12, %v263_v11 }
 0x156   :  { %266 = vadd.xlane.f32.xlu1 %v265_v10 }
 0x158   :  { %257 = vadd.xlane.f32.xlu0 %v256_v13 }
 0x15a   :  { %269 = vadd.xlane.f32.xlu1 %v268_v14 }
 0x1e1   :  { %v255_v15 = vpop.xlane.xlu0 %254 }
 0x1e2   :  { %v259_v16 = vmul.f32 0.00390625, %v255_v15 }
 0x1e3   :  { %v267_v17 = vpop.xlane.xlu1 %266 }
 0x1e4   :  { %v271_v18 = vmul.f32 0.00390625, %v267_v17  ;;  %v273_v19 = vmul.f32 %v259_v16, %v259_v16  ;;  %v277_v33 = vsub.f32 %v249_v1, %v259_v16  ;;  %v278_v34 = vsub.f32 %v250_v5, %v259_v16 }
 0x1e5   :  { %v258_v20 = vpop.xlane.xlu0 %257 }
 0x1e6   :  { %v275_v21 = vsub.f32 %v271_v18, %v273_v19  ;;  %v260_v22 = vmul.f32 0.00390625, %v258_v20 }
 0x1e7   :  { %v270_v23 = vpop.xlane.xlu1 %269 }
 0x1e8   :  { %v281_v24 = vadd.f32 1e-05, %v275_v21  ;;  %v272_v25 = vmul.f32 0.00390625, %v270_v23  ;;  %v274_v26 = vmul.f32 %v260_v22, %v260_v22  ;;  %v279_v44 = vsub.f32 %v251_v4, %v260_v22 }
 0x1e9   :  { %v280_v45 = vsub.f32 %v252_v7, %v260_v22 }
 0x1ea   :  { %452 = vrsqrt.f32 %v281_v24  ;;  %v276_v27 = vsub.f32 %v272_v25, %v274_v26 }
 0x1ec   :  { %v282_v28 = vadd.f32 1e-05, %v276_v27 }
 0x1ee   :  { %454 = vrsqrt.f32 %v282_v28 }
 0x1f4   :  { %v453_v35 = vpop.eup %452 }
 0x1f5   :  { %v285_v39 = vmul.f32 %v453_v35, %v277_v33  ;;  %v286_v41 = vmul.f32 %v453_v35, %v278_v34 }
 0x1f7   :  { %v301_v42 = vmul.f32 %v294_v31, %v285_v39  ;;  %v302_v43 = vmul.f32 %v298_v32, %v286_v41 }
 0x1f8   :  { %v455_v46 = vpop.eup %454 }
 0x1f9   :  { %v317_v47 = vadd.f32 %v310_v36, %v301_v42  ;;  %v318_v48 = vadd.f32 %v314_v37, %v302_v43  ;;  %v287_v49 = vmul.f32 %v455_v46, %v279_v44  ;;  %v288_v50 = vmul.f32 %v455_v46, %v280_v45 }
 0x1fb   :  { %321 = vst [vmem:[#allocation8] sm:$0xff] %v317_v47  ;;  %322 = vst [vmem:[#allocation8 + $0x8] sm:$0xff] %v318_v48  ;;  %v303_v51 = vmul.f32 %v294_v31, %v287_v49  ;;  %v304_v52 = vmul.f32 %v298_v32, %v288_v50 }
 0x1fd   :  { %v319_v38 = vadd.f32 %v310_v36, %v303_v51  ;;  %v320_v53 = vadd.f32 %v314_v37, %v304_v52 }
 0x1ff   :  { %323 = vst [vmem:[#allocation8 + $0x10] sm:$0xff] %v319_v38  ;;  %324 = vst [vmem:[#allocation8 + $0x18] sm:$0xff] %v320_v53 }
 0x200   :  { %511 = shalt.err (!%p508_p6)
}
 0x201   :  { %s512_s25 = scalar_lea.hbm %s632_s5, 512 }
 0x202   :  { %p513_p7 = scmp.ne.s32.totalorder %s632_s5, %s512_s25  ;;  %p516_p8 = scmp.lt.u32.totalorder %s512_s25, %s632_s5 }
 0x204   :  { %p518_p9 = pnand %p516_p8, %p513_p7 }
 0x206   :  { %521 = shalt.err (!%p518_p9)
}
 0x207   :  { %336 = dma.vmem_to_hbm [thread:$0]  %s331_s4, 512, %s632_s5, [#allocation5], %s529_s28, %s529_s28, %s530_s29  }
 0x208   :  { %526 = dma.done.wait [#allocation5], 512  }
 0x209   :  { %527 = vsyncadd [#allocation5], 4294966784 }
 0x20a   :  { %340 = vsyncpa [#allocation4], 1 }
 0x20b   :  { %341 = vsyncpa [#allocation7], 1 }
 0x20c   :  { %342 = vsyncpa [#allocation5], 1 }

</bundles_post_ra>
